<compile_context>
chip_gen: v7x
topology: tpu7x:2x2x1
jax: 0.10.0
libtpu: 0.0.40
codegen_flags: <defaults>
</compile_context>

<pallas_src>
import functools

import jax
import jax.numpy as jnp
from jax.experimental import pallas as pl
from jax.experimental.pallas import tpu as pltpu

_LANE = 128
_SUBLANE = 8


def _round_up(x, m):
    return ((x + m - 1) // m) * m


def _cdiv(a, b):
    return -(-a // b)


# ---------------------------------------------------------------------------
# Kernels
# ---------------------------------------------------------------------------

def _att_output_kernel(x_ref, res_ref, wT_ref, p_ref, o_ref, *, eps, precision):
    """Resident-weight variant. Grid: (row tiles,).

    x_ref, res_ref, o_ref : (TM, H) token tile
    wT_ref                : (H, H)  dense weight, pre-transposed (kernel does x @ W^T)
    p_ref                 : (3, H)  f32 [bias; gamma; beta]
    """
    # Dense layer on the MXU: operands in native dtype, f32 accumulation.
    y = jnp.dot(x_ref[...], wT_ref[...],
                preferred_element_type=jnp.float32, precision=precision)

    # TODO(synk): dropout is identity in eval mode; training-mode dropout
    # (pltpu.prng_random_bits mask) is not implemented.

    p = p_ref[...]
    y = y + p[0:1, :] + res_ref[...].astype(jnp.float32)

    # LayerNorm over hidden axis (biased variance, eps inside sqrt) - matches
    # torch.nn.LayerNorm.
    mean = jnp.mean(y, axis=-1, keepdims=True)
    c = y - mean
    var = jnp.mean(c * c, axis=-1, keepdims=True)
    inv = jax.lax.rsqrt(var + eps)
    o_ref[...] = (c * inv * p[1:2, :] + p[2:3, :]).astype(o_ref.dtype)


def _att_output_ktiled_kernel(x_ref, res_ref, wT_ref, p_ref, o_ref, acc_ref, *,
                              eps, precision):
    """K-tiled variant for weights too large to keep resident (v7x large-H).

    Grid: (row tiles, K tiles).  W^T is streamed (tk, H) per step into an f32
    (TM, H) accumulator; bias + residual + LayerNorm run on the last K step.
    """
    k = pl.program_id(1)

    @pl.when(k == 0)
    def _():
        acc_ref[...] = jnp.zeros_like(acc_ref)

    acc_ref[...] += jnp.dot(x_ref[...], wT_ref[...],
                            preferred_element_type=jnp.float32,
                            precision=precision)

    @pl.when(k == pl.num_programs(1) - 1)
    def _():
        p = p_ref[...]
        y = acc_ref[...] + p[0:1, :] + res_ref[...].astype(jnp.float32)
        mean = jnp.mean(y, axis=-1, keepdims=True)
        c = y - mean
        var = jnp.mean(c * c, axis=-1, keepdims=True)
        inv = jax.lax.rsqrt(var + eps)
        o_ref[...] = (c * inv * p[1:2, :] + p[2:3, :]).astype(o_ref.dtype)


# ---------------------------------------------------------------------------
# Hardware queries / feature probes
# ---------------------------------------------------------------------------

_BUFFERED_SUPPORT = None


def _buffered_supported():
    """Probe pl.Buffered(1) support once with a tiny kernel (narrow probe;
    real-kernel lowering/VMEM errors are never swallowed)."""
    global _BUFFERED_SUPPORT
    if _BUFFERED_SUPPORT is not None:
        return _BUFFERED_SUPPORT
    if not hasattr(pl, "Buffered"):
        _BUFFERED_SUPPORT = False
        return False
    try:
        def probe_kernel(c_ref, x_ref, o_ref):
            o_ref[...] = x_ref[...] + c_ref[...]

        const = pl.BlockSpec((8, 128), lambda i: (0, 0),
                             pipeline_mode=pl.Buffered(1))
        out = pl.pallas_call(
            probe_kernel,
            out_shape=jax.ShapeDtypeStruct((16, 128), jnp.float32),
            grid=(2,),
            in_specs=[const, pl.BlockSpec((8, 128), lambda i: (i, 0))],
            out_specs=pl.BlockSpec((8, 128), lambda i: (i, 0)),
        )(jnp.ones((8, 128), jnp.float32), jnp.zeros((16, 128), jnp.float32))
        jax.block_until_ready(out)
        _BUFFERED_SUPPORT = bool(jnp.allclose(out, 1.0))
    except Exception:
        _BUFFERED_SUPPORT = False
    return _BUFFERED_SUPPORT


def _vmem_capacity_bytes():
    try:
        cap = int(pltpu.get_tpu_info().vmem_capacity_bytes)
        if cap > 0:
            return cap
    except Exception:
        pass
    return 64 << 20   # conservative (v7x-sized); safe on every generation


def _const_spec(block_shape, index_map):
    if _buffered_supported():
        # Block index never changes -> one VMEM copy is enough.
        return pl.BlockSpec(block_shape, index_map, pipeline_mode=pl.Buffered(1))
    return pl.BlockSpec(block_shape, index_map)


# ---------------------------------------------------------------------------
# VMEM working-set estimates & tile selection
# ---------------------------------------------------------------------------

def _est_resident(tm, H, act_b, out_b, w_b, w_bufs):
    ws = w_bufs * H * H * w_b            # resident dense weight
    ws += 2 * tm * H * act_b * 2         # x + residual tiles, double-buffered
    ws += 2 * tm * H * out_b             # output tile, double-buffered
    ws += 2 * 8 * H * 4                  # (3,H)->(8,H) f32 params
    ws += 3 * tm * H * 4                 # f32 epilogue temporaries (estimate)
    return ws


def _est_ktiled(tm, tk, H, act_b, out_b, w_b):
    ws = 2 * tk * H * w_b                # streamed weight slab, double-buffered
    ws += 2 * tm * tk * act_b            # x slab
    ws += 2 * tm * H * act_b             # residual tile
    ws += 2 * tm * H * out_b             # output tile
    ws += tm * H * 4                     # f32 row accumulator scratch
    ws += 2 * 8 * H * 4                  # params
    ws += 2 * tm * H * 4                 # epilogue temporaries (estimate)
    return ws


def _tk_candidates(H):
    # multiples of 128 that divide H, descending
    return [d for d in range(H, _LANE - 1, -_LANE) if H % d == 0]


def _choose_ktiled_tiles(tm0, H, act_b, out_b, w_b, budget):
    tm = tm0
    while True:
        for tk in _tk_candidates(H):
            if _est_ktiled(tm, tk, H, act_b, out_b, w_b) <= budget:
                return tm, tk
        if tm <= _SUBLANE:
            return _SUBLANE, _LANE
        tm = max(_SUBLANE, _round_up(tm // 2, _SUBLANE))


# ---------------------------------------------------------------------------
# pallas_call builders
# ---------------------------------------------------------------------------

def _build_resident_call(N, H, tm, out_dtype, eps, precision, vmem_limit):
    kernel = functools.partial(_att_output_kernel, eps=eps, precision=precision)
    return pl.pallas_call(
        kernel,
        out_shape=jax.ShapeDtypeStruct((N, H), out_dtype),
        grid_spec=pltpu.PrefetchScalarGridSpec(
            num_scalar_prefetch=0,
            grid=(_cdiv(N, tm),),
            in_specs=[
                pl.BlockSpec((tm, H), lambda i: (i, 0)),     # x
                pl.BlockSpec((tm, H), lambda i: (i, 0)),     # residual
                _const_spec((H, H), lambda i: (0, 0)),       # W^T (resident)
                _const_spec((3, H), lambda i: (0, 0)),       # [bias;gamma;beta]
            ],
            out_specs=pl.BlockSpec((tm, H), lambda i: (i, 0)),
        ),
        input_output_aliases={0: 0},     # output reuses the hidden_states buffer
        # TODO(synk): on v6e, if xprof shows exposed DMA between steps, sweep
        # pipeline_mode=pl.Buffered(3) on the x/residual specs (128 MiB VMEM
        # easily holds the extra buffers).
        compiler_params=pltpu.CompilerParams(
            # "parallel" lets the single row axis shard across v7x's 2 TCs.
            dimension_semantics=("parallel",),
            vmem_limit_bytes=int(vmem_limit)),
    )


def _build_ktiled_call(N, H, tm, tk, out_dtype, eps, precision, vmem_limit):
    kernel = functools.partial(_att_output_ktiled_kernel, eps=eps,
                               precision=precision)
    return pl.pallas_call(
        kernel,
        out_shape=jax.ShapeDtypeStruct((N, H), out_dtype),
        grid_spec=pltpu.PrefetchScalarGridSpec(
            num_scalar_prefetch=0,
            grid=(_cdiv(N, tm), H // tk),
            in_specs=[
                pl.BlockSpec((tm, tk), lambda i, k: (i, k)),  # x (K slab)
                pl.BlockSpec((tm, H), lambda i, k: (i, 0)),   # residual
                pl.BlockSpec((tk, H), lambda i, k: (k, 0)),   # W^T streamed over K
                _const_spec((3, H), lambda i, k: (0, 0)),     # [bias;gamma;beta]
            ],
            out_specs=pl.BlockSpec((tm, H), lambda i, k: (i, 0)),
            scratch_shapes=[pltpu.VMEM((tm, H), jnp.float32)],
        ),
        input_output_aliases={0: 0},
        compiler_params=pltpu.CompilerParams(
            dimension_semantics=("parallel", "arbitrary"),
            vmem_limit_bytes=int(vmem_limit)),
    )


# ---------------------------------------------------------------------------
# Wrappers
# ---------------------------------------------------------------------------

def prepare_att_output_params(weight, bias, gamma, beta):
    """Hoisted out of the per-call hot path: do the (out,in) -> (in,out)
    transpose and the f32 param packing once at parameter-load time."""
    wT = jnp.asarray(weight).T                                  # (H_in, H_out)
    params = jnp.stack([jnp.asarray(bias), jnp.asarray(gamma),
                        jnp.asarray(beta)]).astype(jnp.float32)  # (3, H)
    return wT, params


def _xla_small_h(x2d, r2d, wT, params, eps, precision, out_dtype):
    # Lane-sparse hidden sizes (<128): plain XLA fusion beats a masked-store
    # Pallas kernel here (per review); identical math to the kernel epilogue.
    y = jnp.dot(x2d, wT, preferred_element_type=jnp.float32, precision=precision)
    y = y + params[0] + r2d.astype(jnp.float32)
    mean = jnp.mean(y, axis=-1, keepdims=True)
    c = y - mean
    var = jnp.mean(c * c, axis=-1, keepdims=True)
    inv = jax.lax.rsqrt(var + eps)
    return (c * inv * params[1] + params[2]).astype(out_dtype)


def att_output_prepared(hidden_states, input_tensor, wT, params, *,
                        eps=1e-12, block_rows=1024, block_k=None,
                        path="auto", precision=None,
                        small_h_xla_fallback=True):
    """hidden_states, input_tensor: (B, S, H). wT: (H_in, H_out) pre-transposed
    dense weight. params: (3, H) f32 [bias; gamma; beta].

    precision: pass jax.lax.Precision.HIGHEST for strict float32 matmul
    fidelity vs the PyTorch reference (default follows the backend's default
    matmul precision policy, like a plain XLA linear layer would)."""
    B, S, H = hidden_states.shape
    N = B * S
    out_dtype = hidden_states.dtype

    x2d = hidden_states.reshape(N, H)
    r2d = input_tensor.reshape(N, H)

    if small_h_xla_fallback and H < _LANE and path == "auto":
        out2d = _xla_small_h(x2d, r2d, wT, params, eps, precision, out_dtype)
        return out2d.reshape(B, S, H)

    act_b = jnp.dtype(x2d.dtype).itemsize
    out_b = jnp.dtype(out_dtype).itemsize
    w_b = jnp.dtype(wT.dtype).itemsize

    cap = _vmem_capacity_bytes()
    budget = (cap * 3) // 4                      # 48 MiB on v7x, 96 MiB on v5e/v6e
    w_bufs = 1 if _buffered_supported() else 2

    # Row tile: big enough to amortize the ~0.35us/step pipeline overhead and
    # fill the MXU M dim; capped so the grid has >=2 steps (v7x dual-TC).
    tm_cap = max(_SUBLANE, min(block_rows, _round_up(_cdiv(N, 2), _SUBLANE)))

    if path == "auto":
        # Keep the weight resident unless it cannot fit next to a reasonable
        # (128-row) activation tile -- shrinking tm can never fix that case.
        if (H % _LANE == 0 and
                _est_resident(min(tm_cap, 128), H, act_b, out_b, w_b, w_bufs)
                > budget):
            path = "ktiled"
        else:
            path = "resident"

    if path == "resident":
        fixed = w_bufs * H * H * w_b
        # Do not collapse tm when the fixed weight term already exceeds the
        # budget (that would only add per-step overhead without helping VMEM).
        tm_floor = _SUBLANE if fixed <= budget else min(tm_cap, 256)
        tm = tm_cap
        while tm > tm_floor and _est_resident(tm, H, act_b, out_b, w_b, w_bufs) > budget:
            tm = max(tm_floor, _round_up(tm // 2, _SUBLANE))
        est = _est_resident(tm, H, act_b, out_b, w_b, w_bufs)
        vmem_limit = max(32 << 20, min(cap - (8 << 20), est + (16 << 20)))
        call = _build_resident_call(N, H, tm, out_dtype, eps, precision, vmem_limit)
    else:
        assert H % _LANE == 0, "k-tiled path requires hidden size % 128 == 0"
        tm = min(tm_cap, 512)
        if block_k is not None:
            assert block_k % _LANE == 0 and H % block_k == 0
            tk = block_k
        else:
            tm, tk = _choose_ktiled_tiles(tm, H, act_b, out_b, w_b, budget)
        est = _est_ktiled(tm, tk, H, act_b, out_b, w_b)
        vmem_limit = max(32 << 20, min(cap - (8 << 20), est + (16 << 20)))
        call = _build_ktiled_call(N, H, tm, tk, out_dtype, eps, precision, vmem_limit)

    out2d = call(x2d, r2d, wT, params)
    return out2d.reshape(B, S, H)


def att_output(hidden_states, input_tensor, weight, bias, gamma, beta, **kwargs):
    """Compatibility wrapper taking nn.Linear-layout weight (out, in).
    Prefer prepare_att_output_params() + att_output_prepared() so the
    transpose/packing is done once at load time, not every forward."""
    wT, params = prepare_att_output_params(weight, bias, gamma, beta)
    return att_output_prepared(hidden_states, input_tensor, wT, params, **kwargs)


# ---------------------------------------------------------------------------
# Reference & demo
# ---------------------------------------------------------------------------

def _reference(hidden_states, input_tensor, weight, bias, gamma, beta, eps=1e-12):
    x = hidden_states.astype(jnp.float32)
    w = weight.astype(jnp.float32)
    y = jnp.einsum("bsh,oh->bso", x, w) + bias.astype(jnp.float32)
    y = y + input_tensor.astype(jnp.float32)
    mean = jnp.mean(y, axis=-1, keepdims=True)
    var = jnp.mean((y - mean) ** 2, axis=-1, keepdims=True)
    out = (y - mean) / jnp.sqrt(var + eps) * gamma.astype(jnp.float32) \
        + beta.astype(jnp.float32)
    return out.astype(hidden_states.dtype)


def _make_case(key, B, S, H, dtype=jnp.float32):
    k_hs, k_in, k_w, k_b, k_g, k_be = jax.random.split(key, 6)
    hs = jax.random.normal(k_hs, (B, S, H), dtype=jnp.float32).astype(dtype)
    it = jax.random.normal(k_in, (B, S, H), dtype=jnp.float32).astype(dtype)
    bound = 1.0 / (H ** 0.5)
    w = jax.random.uniform(k_w, (H, H), minval=-bound, maxval=bound,
                           dtype=jnp.float32).astype(dtype)   # (out, in)
    b = jax.random.uniform(k_b, (H,), minval=-bound, maxval=bound,
                           dtype=jnp.float32).astype(dtype)
    g = jax.random.uniform(k_g, (H,), minval=0.5, maxval=1.5,
                           dtype=jnp.float32).astype(dtype)
    be = (0.1 * jax.random.normal(k_be, (H,), dtype=jnp.float32)).astype(dtype)
    return hs, it, w, b, g, be


def _check(out, ref, name, atol=2e-3, rtol=2e-3):
    # Tolerance covers possible differences in the backend's default f32
    # matmul-precision policy between XLA and Mosaic; pass
    # precision=jax.lax.Precision.HIGHEST for strict f32 fidelity.
    assert out.shape == ref.shape, f"{name}: shape mismatch"
    assert bool(jnp.allclose(out, ref, atol=atol, rtol=rtol)), f"{name}: mismatch"


if __name__ == "__main__":
    key = jax.random.PRNGKey(0)
    k1, k2, k3 = jax.random.split(key, 3)

    # Case 1: lane-dense small config (cross_vis_hidden_size = 128),
    # resident-weight Pallas path, hoisted weight preparation.
    hs, it, w, b, g, be = _make_case(k1, B=2, S=8, H=128)
    ref1 = jax.block_until_ready(_reference(hs, it, w, b, g, be))
    wT, params = prepare_att_output_params(w, b, g, be)
    out1 = jax.block_until_ready(att_output_prepared(hs, it, wT, params))
    _check(out1, ref1, "resident path (H=128)")

    # Case 2: K-tiled path forced (exercises the large-H structural fallback),
    # with a ragged last row block (N = 24, tm = 16).
    hs, it, w, b, g, be = _make_case(k2, B=2, S=12, H=256)
    ref2 = jax.block_until_ready(_reference(hs, it, w, b, g, be))
    out2 = jax.block_until_ready(
        att_output(hs, it, w, b, g, be, path="ktiled", block_k=128))
    _check(out2, ref2, "k-tiled path (H=256)")

    # Case 3: tiny lane-sparse hidden size (cross_vis_hidden_size = 32):
    # routed to the XLA-fused fallback per the perf review.
    hs, it, w, b, g, be = _make_case(k3, B=2, S=8, H=32)
    ref3 = jax.block_until_ready(_reference(hs, it, w, b, g, be))
    out3 = jax.block_until_ready(att_output(hs, it, w, b, g, be))
    _check(out3, ref3, "small-H XLA fallback (H=32)")

    print("KERNEL_OK")
</pallas_src>

<mosaic_0001>
module attributes {stable_mosaic.version = 11 : i64} {
  func.func @probe_kernel(%arg0: i32, %arg1: memref<8x128xf32, #tpu.memory_space<vmem>>, %arg2: memref<8x128xf32, #tpu.memory_space<vmem>>, %arg3: memref<8x128xf32, #tpu.memory_space<vmem>>) attributes {dimension_semantics = [#tpu.dimension_semantics<arbitrary>], iteration_bounds = array<i64: 2>, scalar_prefetch = 0 : i64, scratch_operands = 0 : i64, tpu.core_type = #tpu.core_type<tc>, window_params = [{pipeline_mode = #tpu.pipeline_mode<synchronous>, transform_indices = @transform_0, window_bounds = array<i64: 8, 128>}, {transform_indices = @transform_1, window_bounds = array<i64: 8, 128>}, {transform_indices = @transform_2, window_bounds = array<i64: 8, 128>}]} {
    %c0 = arith.constant 0 : index
    %c0_0 = arith.constant 0 : index
    %0 = vector.load %arg2[%c0, %c0_0] : memref<8x128xf32, #tpu.memory_space<vmem>>, vector<8x128xf32>
    %c0_1 = arith.constant 0 : index
    %c0_2 = arith.constant 0 : index
    %1 = vector.load %arg1[%c0_1, %c0_2] : memref<8x128xf32, #tpu.memory_space<vmem>>, vector<8x128xf32>
    %2 = arith.addf %0, %1 : vector<8x128xf32>
    %c0_3 = arith.constant 0 : index
    %c0_4 = arith.constant 0 : index
    %3 = vector.load %arg3[%c0_3, %c0_4] : memref<8x128xf32, #tpu.memory_space<vmem>>, vector<8x128xf32>
    tpu.vector_store %arg3[%c0_3, %c0_4], %2 {strides = array<i32>} : memref<8x128xf32, #tpu.memory_space<vmem>>, vector<8x128xf32>,
    return
  }
  func.func @transform_0(%arg0: i32) -> (i32, i32) {
    %c0_i32 = arith.constant 0 : i32
    %c0_i32_0 = arith.constant 0 : i32
    %c0_i32_1 = arith.constant 0 : i32
    return %c0_i32, %c0_i32_0 : i32, i32
  }
  func.func @transform_1(%arg0: i32) -> (i32, i32) {
    %c0_i32 = arith.constant 0 : i32
    %c0_i32_0 = arith.constant 0 : i32
    return %arg0, %c0_i32 : i32, i32
  }
  func.func @transform_2(%arg0: i32) -> (i32, i32) {
    %c0_i32 = arith.constant 0 : i32
    %c0_i32_0 = arith.constant 0 : i32
    return %arg0, %c0_i32 : i32, i32
  }
}

module attributes {stable_mosaic.version = 11 : i64} {
  func.func @_att_output_kernel(%arg0: i32, %arg1: memref<8x128xf32, #tpu.memory_space<vmem>>, %arg2: memref<8x128xf32, #tpu.memory_space<vmem>>, %arg3: memref<128x128xf32, #tpu.memory_space<vmem>>, %arg4: memref<3x128xf32, #tpu.memory_space<vmem>>, %arg5: memref<8x128xf32, #tpu.memory_space<vmem>>) attributes {dimension_semantics = [#tpu.dimension_semantics<parallel>], iteration_bounds = array<i64: 2>, scalar_prefetch = 0 : i64, scratch_operands = 0 : i64, tpu.core_type = #tpu.core_type<tc>, window_params = [{transform_indices = @transform_0, window_bounds = array<i64: 8, 128>}, {transform_indices = @transform_1, window_bounds = array<i64: 8, 128>}, {pipeline_mode = #tpu.pipeline_mode<synchronous>, transform_indices = @transform_2, window_bounds = array<i64: 128, 128>}, {pipeline_mode = #tpu.pipeline_mode<synchronous>, transform_indices = @transform_3, window_bounds = array<i64: 3, 128>}, {transform_indices = @transform_4, window_bounds = array<i64: 8, 128>}]} {
    %c0 = arith.constant 0 : index
    %c0_0 = arith.constant 0 : index
    %0 = vector.load %arg1[%c0, %c0_0] : memref<8x128xf32, #tpu.memory_space<vmem>>, vector<8x128xf32>
    %c0_1 = arith.constant 0 : index
    %c0_2 = arith.constant 0 : index
    %1 = vector.load %arg3[%c0_1, %c0_2] : memref<128x128xf32, #tpu.memory_space<vmem>>, vector<128x128xf32>
    %cst = arith.constant dense<0.000000e+00> : vector<8x128xf32>
    %2 = tpu.matmul %0, %1, %cst {dimension_numbers = #tpu.dot_dimension_numbers<[1], [0], [0], [1], [0, 0, 1, 1], [], []>} : vector<8x128xf32>, vector<128x128xf32>, vector<8x128xf32> -> vector<8x128xf32>
    %c0_3 = arith.constant 0 : index
    %c0_4 = arith.constant 0 : index
    %3 = vector.load %arg4[%c0_3, %c0_4] : memref<3x128xf32, #tpu.memory_space<vmem>>, vector<3x128xf32>
    %4 = vector.extract_strided_slice %3 {offsets = [0, 0], sizes = [1, 128], strides = [1, 1]} : vector<3x128xf32> to vector<1x128xf32>
    %5 = vector.broadcast %4 : vector<1x128xf32> to vector<8x128xf32>
    %6 = arith.addf %2, %5 : vector<8x128xf32>
    %c0_5 = arith.constant 0 : index
    %c0_6 = arith.constant 0 : index
    %7 = vector.load %arg2[%c0_5, %c0_6] : memref<8x128xf32, #tpu.memory_space<vmem>>, vector<8x128xf32>
    %8 = arith.addf %6, %7 : vector<8x128xf32>
    %cst_7 = arith.constant dense<0.000000e+00> : vector<8xf32>
    %9 = vector.multi_reduction <add>, %8, %cst_7 [1] : vector<8x128xf32> to vector<8xf32>
    %10 = vector.shape_cast %9 : vector<8xf32> to vector<8x1xf32>
    %cst_8 = arith.constant 1.280000e+02 : f32
    %11 = vector.broadcast %cst_8 : f32 to vector<8x1xf32>
    %12 = arith.divf %10, %11 : vector<8x1xf32>
    %13 = vector.broadcast %12 : vector<8x1xf32> to vector<8x128xf32>
    %14 = arith.subf %8, %13 : vector<8x128xf32>
    %15 = arith.mulf %14, %14 : vector<8x128xf32>
    %cst_9 = arith.constant dense<0.000000e+00> : vector<8xf32>
    %16 = vector.multi_reduction <add>, %15, %cst_9 [1] : vector<8x128xf32> to vector<8xf32>
    %17 = vector.shape_cast %16 : vector<8xf32> to vector<8x1xf32>
    %cst_10 = arith.constant 1.280000e+02 : f32
    %18 = vector.broadcast %cst_10 : f32 to vector<8x1xf32>
    %19 = arith.divf %17, %18 : vector<8x1xf32>
    %cst_11 = arith.constant 9.99999996E-13 : f32
    %20 = vector.broadcast %cst_11 : f32 to vector<8x1xf32>
    %21 = arith.addf %19, %20 : vector<8x1xf32>
    %22 = math.rsqrt %21 : vector<8x1xf32>
    %23 = vector.broadcast %22 : vector<8x1xf32> to vector<8x128xf32>
    %24 = arith.mulf %14, %23 : vector<8x128xf32>
    %25 = vector.extract_strided_slice %3 {offsets = [1, 0], sizes = [1, 128], strides = [1, 1]} : vector<3x128xf32> to vector<1x128xf32>
    %26 = vector.broadcast %25 : vector<1x128xf32> to vector<8x128xf32>
    %27 = arith.mulf %24, %26 : vector<8x128xf32>
    %28 = vector.extract_strided_slice %3 {offsets = [2, 0], sizes = [1, 128], strides = [1, 1]} : vector<3x128xf32> to vector<1x128xf32>
    %29 = vector.broadcast %28 : vector<1x128xf32> to vector<8x128xf32>
    %30 = arith.addf %27, %29 : vector<8x128xf32>
    %c0_12 = arith.constant 0 : index
    %c0_13 = arith.constant 0 : index
    %31 = vector.load %arg5[%c0_12, %c0_13] : memref<8x128xf32, #tpu.memory_space<vmem>>, vector<8x128xf32>
    tpu.vector_store %arg5[%c0_12, %c0_13], %30 {strides = array<i32>} : memref<8x128xf32, #tpu.memory_space<vmem>>, vector<8x128xf32>,
    return
  }
  func.func @transform_0(%arg0: i32) -> (i32, i32) {
    %c0_i32 = arith.constant 0 : i32
    %c0_i32_0 = arith.constant 0 : i32
    return %arg0, %c0_i32 : i32, i32
  }
  func.func @transform_1(%arg0: i32) -> (i32, i32) {
    %c0_i32 = arith.constant 0 : i32
    %c0_i32_0 = arith.constant 0 : i32
    return %arg0, %c0_i32 : i32, i32
  }
  func.func @transform_2(%arg0: i32) -> (i32, i32) {
    %c0_i32 = arith.constant 0 : i32
    %c0_i32_0 = arith.constant 0 : i32
    %c0_i32_1 = arith.constant 0 : i32
    return %c0_i32, %c0_i32_0 : i32, i32
  }
  func.func @transform_3(%arg0: i32) -> (i32, i32) {
    %c0_i32 = arith.constant 0 : i32
    %c0_i32_0 = arith.constant 0 : i32
    %c0_i32_1 = arith.constant 0 : i32
    return %c0_i32, %c0_i32_0 : i32, i32
  }
  func.func @transform_4(%arg0: i32) -> (i32, i32) {
    %c0_i32 = arith.constant 0 : i32
    %c0_i32_0 = arith.constant 0 : i32
    return %arg0, %c0_i32 : i32, i32
  }
}

</mosaic_0001>

<bundles_post_ra>
// kernel: tpu_custom_call.1
= control target key start
LH: loop header
LB: loop body
LE: loop exit
PB: predicated region body
PF: predicated region fallthrough
CT: control target
= control target key end

     0   :  { %7 = vsyncpa [#allocation3], 0  ;;  %s692_s0 = inlined_call_operand.hbm [shape: f32[8,128], index: 0, kind: input, shape index: {}]   ;;  %s693_s1 = inlined_call_operand.hbm [shape: f32[16,128], index: 1, kind: input, shape index: {}]   ;;  %s694_s2 = inlined_call_operand.hbm [shape: f32[16,128], index: 2, kind: output, shape index: {}]  }
   0x1   :  { %8 = vsyncpa [#allocation6], 0 }
   0x2   :  { %10 = vsyncpa [#allocation6 + $0x1], 0 }
   0x3   :  { %11 = vsyncpa [#allocation4], 0 }
   0x4   :  { %13 = vsyncpa [#allocation4 + $0x1], 0  ;;  %s491_s9 = smov 0   ;;  %s493_s10 = smov 0  }
   0x5   :  { %s495_s11 = smov 0   ;;  %s497_s12 = smov 0  }
   0x6 LB: > { %s512_s13 = sadd.s32 4294967295, %s471_s12   ;;  %s272_s14 = sadd.s32 4294967294, %s471_s12   ;;  %s471_s12 = sphi %s497_s12, %s718_s12   ;;  %s467_s11 = sphi %s495_s11, %s717_s11   ;;  %s463_s10 = sphi %s493_s10, %s716_s10   ;;  %s459_s9 = sphi %s491_s9, %s715_s9  }
   0x7   : > { %p60_p0 = scmp.ne.s32.totalorder %s463_s10, %s459_s9  ;;  %p695_p1 = scmp.eq.s32.totalorder %s512_s13, 0 }
   0x8   : > { %p90_p3 = scmp.eq.s32.totalorder %s272_s14, 1  ;;  %p273_p5 = scmp.ge.s32.totalorder %s471_s12, 1 }
   0x9   : > { %p521_p4 = por %p695_p1, %p60_p0  ;;  %p97_p7 = scmp.lt.s32.totalorder %s471_s12, 3 }
   0xa   : > { %p526_p6 = por %p90_p3, %p60_p0  ;;  %s473_s18 = smov [#allocation2]  }
   0xb   : > { %s698_s15 = scalar_select %p521_p4, 1, 0 }
   0xc   : > { %s699_s16 = scalar_select %p526_p6, 1, 0 }
   0xd   : > { %p531_p8 = pnand %p273_p5, %p97_p7  ;;  %s110_s19 = sshll.u32 %s473_s18, 4  ;;  %s111_s19 = int_to_ptr.vmem [resolvable:$true] %s110_s19 }
   0xe   : > { %s539_s20 = sadd.s32 1, %s471_s12   ;;  %s47_s24 = sadd.s32 1, %s467_s11 }
   0xf   : > { %s700_s17 = scalar_select %p531_p8, 1, 0 }
  0x10   : > { %p294_p10 = pneg %p531_p8  ;;  %s44_s22 = ssub.s32 %s471_s12, %s539_s20 }
  0x11   : > { %p549_p12 = scmp.eq.s32.totalorder %s44_s22, 0  ;;  %s343_s27 = scalar_lea.hbm %s692_s0, 128 }
  0x12   : > { %p543_p11 = pnand %p294_p10, %p695_p1  ;;  %p344_p0 = scmp.ne.s32.totalorder %s692_s0, %s343_s27 }
  0x13   : > { %s702_s23 = scalar_select %p549_p12, 1, 0 }
  0x14   : > { %p345_p3 = pneg %p543_p11  ;;  %p350_p10 = scmp.lt.u32.totalorder %s343_s27, %s692_s0 }
  0x16   : > { %p346_p5 = pnand %p345_p3, %p344_p0 }
  0x18   : > { %p347_p7 = pneg %p346_p5 }
  0x1a   : > { %p352_p9 = pnand %p350_p10, %p347_p7 }
  0x1c   : > { %355 = shalt.err (!%p352_p9)
}
  0x1d   : > { %s356_s4 = scalar_lea.vmem %s111_s19, 128  ;;  %p364_p6 = scmp.lt.s32.totalorder %s111_s19, %s111_s19 }
  0x1e   : > { %p357_p1 = scmp.ne.s32.totalorder %s111_s19, %s356_s4  ;;  %p365_p4 = scmp.lt.s32.totalorder %s356_s4, %s356_s4 }
  0x20   : > { %p359_p2 = pnand %p357_p1, %p345_p3  ;;  %p366_p8 = por %p365_p4, %p364_p6 }
  0x22   : > { %p360_p13 = pneg %p359_p2 }
  0x24   : > { %p367_p12 = pnand %p366_p8, %p360_p13 }
  0x26   : > { %370 = shalt.err (!%p367_p12)
}
  0x27   : > { %297 = dma.hbm_to_vmem [thread:$0]  (!%p543_p11), %s692_s0, 128, %s111_s19, [#allocation3]  }
  0x28   : > { %p703_p1 = scmp.ne.s32.totalorder %s702_s23, 0  ;;  %p55_p2 = scmp.eq.s32.totalorder %s471_s12, 0 }
  0x29   : > { %p704_p4 = scmp.ne.s32.totalorder %s467_s11, %s463_s10  ;;  %p705_p6 = scmp.eq.s32.totalorder %s512_s13, 1 }
  0x2a   : > { %s575_s7 = scalar_select %p703_p1, %s467_s11, %s47_s24  }
  0x2b   : > { %p583_p8 = por %p705_p6, %p704_p4  ;;  %p307_p9 = scmp.lt.s32.totalorder %s471_s12, 2 }
  0x2c   : > { %s121_s14 = sand.u32 1, %s467_s11   ;;  %p707_p12 = pmov %p704_p4 }
  0x2d   : > { %s276_s18 = sshll.u32 %s121_s14, 3  ;;  %s277_s21 = sshll.u32 %s471_s12, 7 }
  0x2e   : > { %p56_p13 = por %p55_p2, %p707_p12  ;;  %s596_s19 = scalar_lea.hbm %s693_s1, %s277_s21 }
  0x2f   : > { %s125_s23 = scalar_lea.vmem [#allocation5], %s276_s18  ;;  %s122_s27 = scalar_lea.sflag [#allocation6], %s121_s14 }
  0x30   : > { %s132_s24 = sshll.u32 %s125_s23, 4  ;;  %p598_p11 = pnand %p307_p9, %p56_p13  ;;  %s602_s24 = int_to_ptr.vmem [resolvable:$true] %s132_s24 }
  0x31   : > { %s371_s28 = scalar_lea.hbm %s596_s19, 128  ;;  %s376_s3 = scalar_lea.hbm %s693_s1, 256 }
  0x32   : > { %p372_p0 = scmp.ne.s32.totalorder %s596_s19, %s371_s28  ;;  %p373_p3 = pneg %p598_p11 }
  0x33   : > { %p377_p10 = scmp.lt.u32.totalorder %s596_s19, %s693_s1  ;;  %p378_p1 = scmp.lt.u32.totalorder %s376_s3, %s371_s28 }
  0x34   : > { %p374_p5 = pnand %p373_p3, %p372_p0  ;;  %p380_p4 = scmp.lt.u32.totalorder %s371_s28, %s596_s19 }
  0x35   : > { %p379_p2 = por %p378_p1, %p377_p10 }
  0x36   : > { %p375_p7 = pneg %p374_p5 }
  0x37   : > { %p381_p6 = por %p380_p4, %p379_p2 }
  0x39   : > { %p382_p9 = pnand %p381_p6, %p375_p7 }
  0x3b   : > { %385 = shalt.err (!%p382_p9)
}
  0x3c   : > { %s386_s6 = scalar_lea.vmem %s602_s24, 128  ;;  %s474_s14 = smov [#allocation5]  }
  0x3d   : > { %p387_p12 = scmp.ne.s32.totalorder %s602_s24, %s386_s6  ;;  %s391_s18 = sshll.u32 %s474_s14, 4  ;;  %s392_s18 = int_to_ptr.vmem [resolvable:$false] %s391_s18 }
  0x3e   : > { %s393_s21 = scalar_lea.vmem %s392_s18, 256  ;;  %p394_p5 = scmp.lt.s32.totalorder %s602_s24, %s392_s18 }
  0x3f   : > { %p389_p13 = pnand %p387_p12, %p373_p3  ;;  %p395_p10 = scmp.lt.s32.totalorder %s393_s21, %s386_s6 }
  0x41   : > { %p390_p0 = pneg %p389_p13  ;;  %p396_p1 = por %p395_p10, %p394_p5 }
  0x43   : > { %p397_p2 = pnand %p396_p1, %p390_p0 }
  0x45   : > { %400 = shalt.err (!%p397_p2)
}
  0x46   : > { %301 = dma.hbm_to_vmem [thread:$0]  (!%p598_p11), %s596_s19, 128, %s602_s24, %s122_s27  }
  0x47   : > { %p709_p7 = scmp.ne.s32.totalorder %s700_s17, 0 }
  0x48   : > { %p710_p3 = scmp.eq.s32.totalorder (!%p709_p7), %s512_s13, 0 }
  0x49   : > { %141 = sbr.rel (%p709_p7) target bundleno = 110 (0x6e), region = 28 }
  0x50   : > { %446 = dma.done.wait (%p710_p3), [#allocation3], 128   ;;  %p711_p4 = pmov %p710_p3 }
  0x51   : > { %s636_s22 = sand.u32 1, %s463_s10   ;;  %p712_p6 = scmp.ne.s32.totalorder %s698_s15, 0 }
  0x52   : > { %448 = vsyncadd (%p711_p4), [#allocation3], 4294967168  ;;  %s280_s25 = sshll.u32 %s636_s22, 3  ;;  %s148_s23 = scalar_lea.sflag [#allocation6], %s636_s22 }
  0x53   : > { %s151_s26 = scalar_lea.vmem [#allocation5], %s280_s25 }
  0x54   : > { %450 = dma.done.wait (%p712_p6), %s148_s23, 128  }
  0x55   : > { %452 = vsyncadd (%p712_p6), %s148_s23, 4294967168  ;;  %s171_s17 = scalar_lea.vmem [#allocation7], %s280_s25  ;;  %s283_s24 = sshll.u32 %s512_s13, 7  ;;  %v172_v0 = vld [vmem:[%s151_s26] sm:$0xff]  ;;  %v173_v1 = vld [vmem:[#allocation2] sm:$0xff] }
  0x56   : > { %s190_s19 = sshll.u32 %s171_s17, 4  ;;  %v174_v2 = vadd.f32 %v173_v1, %v172_v0  ;;  %s650_s29 = scalar_lea.hbm %s694_s2, %s283_s24  ;;  %s645_s19 = int_to_ptr.vmem [resolvable:$true] %s190_s19 }
  0x57   : > { %s177_s15 = scalar_lea.sflag [#allocation4], %s636_s22  ;;  %s401_s30 = scalar_lea.vmem %s645_s19, 128 }
  0x58   : > { %175 = vst [vmem:[%s171_s17] sm:$0xff] %v174_v2  ;;  %p402_p11 = scmp.ne.s32.totalorder %s645_s19, %s401_s30  ;;  %s475_s13 = smov [#allocation7]  }
  0x59   : > { %s405_s3 = sshll.u32 %s475_s13, 4  ;;  %s406_s3 = int_to_ptr.vmem [resolvable:$false] %s405_s3 }
  0x5a   : > { %p403_p9 = pnand %p402_p11, %p583_p8  ;;  %s407_s4 = scalar_lea.vmem %s406_s3, 256 }
  0x5b   : > { %p408_p13 = scmp.lt.s32.totalorder %s645_s19, %s406_s3  ;;  %p409_p0 = scmp.lt.s32.totalorder %s407_s4, %s401_s30 }
  0x5c   : > { %p404_p12 = pneg %p403_p9 }
  0x5d   : > { %p410_p5 = por %p409_p0, %p408_p13 }
  0x5f   : > { %p411_p10 = pnand %p410_p5, %p404_p12 }
  0x61   : > { %414 = shalt.err (!%p411_p10)
}
  0x62   : > { %s415_s5 = scalar_lea.hbm %s650_s29, 128  ;;  %s419_s18 = scalar_lea.hbm %s694_s2, 256 }
  0x63   : > { %p416_p1 = scmp.ne.s32.totalorder %s650_s29, %s415_s5  ;;  %p420_p3 = scmp.lt.u32.totalorder %s650_s29, %s694_s2 }
  0x64   : > { %p421_p4 = scmp.lt.u32.totalorder %s419_s18, %s415_s5  ;;  %p423_p11 = scmp.lt.u32.totalorder %s415_s5, %s650_s29 }
  0x65   : > { %p417_p2 = pnand %p416_p1, %p583_p8 }
  0x66   : > { %p422_p6 = por %p421_p4, %p420_p3 }
  0x67   : > { %p418_p7 = pneg %p417_p2 }
  0x68   : > { %p424_p9 = por %p423_p11, %p422_p6 }
  0x6a   : > { %p425_p12 = pnand %p424_p9, %p418_p7 }
  0x6c   : > { %428 = shalt.err (!%p425_p12)
}
  0x6d   : > { %292 = dma.vmem_to_hbm [thread:$0]  (%p583_p8), %s645_s19, 128, %s650_s29, %s177_s15  }
  0x6e PF: > { %s202_s25 = sand.u32 1, %s459_s9   ;;  %p713_p13 = scmp.ne.s32.totalorder %s699_s16, 0 }
  0x6f   : > { %p714_p0 = scmp.ge.s32.totalorder %s471_s12, 2  ;;  %s203_s23 = scalar_lea.sflag [#allocation4], %s202_s25 }
  0x71   : > { %p303_p5 = pnand %p714_p0, %p713_p13 }
  0x73   : > { %454 = dma.done.wait (!%p303_p5), %s203_s23, 128  }
  0x74   : > { %456 = vsyncadd (!%p303_p5), %s203_s23, 4294967168  ;;  %p16_p10 = scmp.ge.s32.totalorder %s539_s20, 4   ;;  %s715_s9 = smov %s463_s10 }
  0x75   : > { %s716_s10 = smov %s467_s11  ;;  %s717_s11 = smov %s575_s7 }
  0x76   : > { %s718_s12 = smov %s539_s20  ;;  %18 = sbr.rel (!%p16_p10) target bundleno = 6 (0x6), region = 78 }
  0x7d   :  { %208 = vsyncpa [#allocation3], 1 }
  0x7e   :  { %210 = vsyncpa [#allocation3 + $0x1], 1 }
  0x7f   :  { %211 = vsyncpa [#allocation6], 1 }
  0x80   :  { %213 = vsyncpa [#allocation6 + $0x1], 1 }
  0x81   :  { %214 = vsyncpa [#allocation4], 1 }
  0x82   :  { %216 = vsyncpa [#allocation4 + $0x1], 1 }

// kernel: tpu_custom_call.1
= control target key start
LH: loop header
LB: loop body
LE: loop exit
PB: predicated region body
PF: predicated region fallthrough
CT: control target
= control target key end

     0   :  { %9 = vsyncpa [#allocation3], 0  ;;  %s997_s0 = inlined_call_operand.hbm [shape: f32[16,128], index: 0, kind: input, shape index: {}, may-alias: {0,4}]   ;;  %s998_s1 = inlined_call_operand.vmem [shape: f32[16,128], index: 1, kind: input, shape index: {}]   ;;  %s999_s2 = inlined_call_operand.hbm [shape: f32[128,128], index: 2, kind: input, shape index: {}]   ;;  %s1000_s3 = inlined_call_operand.vmem [shape: f32[3,128], index: 3, kind: input, shape index: {}]   ;;  %s1001_s4 = inlined_call_operand.hbm [shape: f32[16,128], index: 4, kind: output, shape index: {}, may-alias: {0,4}]  }
   0x1   :  { %11 = vsyncpa [#allocation3 + $0x1], 0 }
   0x2   :  { %12 = vsyncpa [#allocation6], 0 }
   0x3   :  { %13 = vsyncpa [#allocation4], 0 }
   0x4   :  { %15 = vsyncpa [#allocation4 + $0x1], 0  ;;  %s786_s15 = smov 0   ;;  %s788_s16 = smov 0  }
   0x5   :  { %s790_s17 = smov 0   ;;  %s792_s18 = smov 0  }
   0x6 LB: > { %s807_s19 = sadd.s32 4294967295, %s751_s18   ;;  %s468_s20 = sadd.s32 4294967294, %s751_s18   ;;  %s751_s18 = sphi %s792_s18, %s1021_s18   ;;  %s747_s17 = sphi %s790_s17, %s1020_s17   ;;  %s743_s16 = sphi %s788_s16, %s1019_s16   ;;  %s739_s15 = sphi %s786_s15, %s1018_s15  }
   0x7   : > { %p41_p0 = scmp.ne.s32.totalorder %s743_s16, %s739_s15  ;;  %p1002_p1 = scmp.eq.s32.totalorder %s807_s19, 0 }
   0x8   : > { %p139_p3 = scmp.eq.s32.totalorder %s468_s20, 1  ;;  %p469_p5 = scmp.ge.s32.totalorder %s751_s18, 1 }
   0x9   : > { %p816_p4 = por %p1002_p1, %p41_p0  ;;  %p146_p7 = scmp.lt.s32.totalorder %s751_s18, 3 }
   0xa   : > { %p821_p6 = por %p139_p3, %p41_p0  ;;  %s753_s24 = smov [#allocation5]  }
   0xb   : > { %s1005_s21 = scalar_select %p816_p4, 1, 0 }
   0xc   : > { %s1006_s22 = scalar_select %p821_p6, 1, 0 }
   0xd   : > { %p826_p8 = pnand %p469_p5, %p146_p7  ;;  %s158_s25 = sshll.u32 %s753_s24, 4  ;;  %s830_s25 = int_to_ptr.vmem [resolvable:$true] %s158_s25 }
   0xe   : > { %s842_s27 = sadd.s32 1, %s751_s18   ;;  %s28_s28 = sadd.s32 1, %s747_s17 }
   0xf   : > { %s1007_s23 = scalar_select %p826_p8, 1, 0 }
  0x10   : > { %p567_p9 = pneg %p826_p8  ;;  %s25_s29 = ssub.s32 %s751_s18, %s842_s27 }
  0x11   : > { %s623_s6 = scalar_lea.hbm %s999_s2, 2048 }
  0x12   : > { %p837_p11 = pnand %p567_p9, %p1002_p1  ;;  %p624_p12 = scmp.ne.s32.totalorder %s999_s2, %s623_s6 }
  0x13   : > { %p630_p5 = scmp.lt.u32.totalorder %s623_s6, %s999_s2 }
  0x14   : > { %p625_p13 = pneg %p837_p11 }
  0x16   : > { %p626_p0 = pnand %p625_p13, %p624_p12 }
  0x18   : > { %p627_p3 = pneg %p626_p0 }
  0x1a   : > { %p632_p7 = pnand %p630_p5, %p627_p3 }
  0x1c   : > { %635 = shalt.err (!%p632_p7)
}
  0x1d   : > { %s636_s11 = scalar_lea.vmem %s830_s25, 2048  ;;  %p644_p2 = scmp.lt.s32.totalorder %s830_s25, %s830_s25 }
  0x1e   : > { %p637_p9 = scmp.ne.s32.totalorder %s830_s25, %s636_s11  ;;  %p645_p6 = scmp.lt.s32.totalorder %s636_s11, %s636_s11 }
  0x20   : > { %p639_p10 = pnand %p637_p9, %p625_p13  ;;  %p646_p4 = por %p645_p6, %p644_p2 }
  0x22   : > { %p640_p1 = pneg %p639_p10 }
  0x24   : > { %p647_p8 = pnand %p646_p4, %p640_p1 }
  0x26   : > { %650 = shalt.err (!%p647_p8)
}
  0x27   : > { %s754_s12 = smov 128   ;;  %s755_s13 = smov 8  }
  0x28   : > { %570 = dma.hbm_to_vmem [thread:$0]  (!%p837_p11), %s999_s2, 2048, %s830_s25, [#allocation6], %s754_s12, %s754_s12, %s755_s13  }
  0x29   : > { %p26_p2 = scmp.eq.s32.totalorder %s25_s29, 0  ;;  %p35_p1 = scmp.ne.s32.totalorder %s747_s17, %s743_s16 }
  0x2a   : > { %p36_p4 = scmp.eq.s32.totalorder %s751_s18, 0  ;;  %p580_p6 = scmp.lt.s32.totalorder %s751_s18, 2 }
  0x2b   : > { %s873_s24 = scalar_select %p26_p2, %s747_s17, %s28_s28  }
  0x2c   : > { %p37_p8 = por %p36_p4, %p35_p1  ;;  %p1009_p10 = scmp.eq.s32.totalorder %s807_s19, 1 }
  0x2d   : > { %s175_s5 = sand.u32 1, %s747_s17   ;;  %s473_s6 = sshll.u32 %s751_s18, 7 }
  0x2e   : > { %p877_p12 = por %p1009_p10, %p35_p1  ;;  %s472_s7 = sshll.u32 %s175_s5, 3 }
  0x2f   : > { %s886_s9 = scalar_lea.hbm %s997_s0, %s473_s6  ;;  %s179_s25 = scalar_lea.vmem [#allocation2], %s472_s7 }
  0x30   : > { %s186_s28 = sshll.u32 %s179_s25, 4  ;;  %p888_p11 = pnand %p580_p6, %p37_p8  ;;  %s892_s28 = int_to_ptr.vmem [resolvable:$true] %s186_s28 }
  0x31   : > { %s176_s10 = scalar_lea.sflag [#allocation3], %s175_s5  ;;  %s651_s11 = scalar_lea.hbm %s886_s9, 128 }
  0x32   : > { %p652_p13 = scmp.ne.s32.totalorder %s886_s9, %s651_s11  ;;  %p653_p0 = pneg %p888_p11 }
  0x33   : > { %s656_s14 = scalar_lea.hbm %s997_s0, 256  ;;  %p657_p7 = scmp.lt.u32.totalorder %s886_s9, %s997_s0 }
  0x34   : > { %p654_p3 = pnand %p653_p0, %p652_p13  ;;  %p658_p9 = scmp.lt.u32.totalorder %s656_s14, %s651_s11 }
  0x35   : > { %p660_p1 = scmp.lt.u32.totalorder %s651_s11, %s886_s9 }
  0x36   : > { %p655_p5 = pneg %p654_p3  ;;  %p659_p2 = por %p658_p9, %p657_p7 }
  0x38   : > { %p661_p4 = por %p660_p1, %p659_p2 }
  0x3a   : > { %p662_p6 = pnand %p661_p4, %p655_p5 }
  0x3c   : > { %665 = shalt.err (!%p662_p6)
}
  0x3d   : > { %s666_s5 = scalar_lea.vmem %s892_s28, 128  ;;  %s756_s7 = smov [#allocation2]  }
  0x3e   : > { %p667_p8 = scmp.ne.s32.totalorder %s892_s28, %s666_s5  ;;  %s671_s26 = sshll.u32 %s756_s7, 4  ;;  %s672_s26 = int_to_ptr.vmem [resolvable:$false] %s671_s26 }
  0x3f   : > { %s673_s8 = scalar_lea.vmem %s672_s26, 256  ;;  %p674_p3 = scmp.lt.s32.totalorder %s892_s28, %s672_s26 }
  0x40   : > { %p669_p10 = pnand %p667_p8, %p653_p0  ;;  %p675_p7 = scmp.lt.s32.totalorder %s673_s8, %s666_s5 }
  0x42   : > { %p670_p13 = pneg %p669_p10  ;;  %p676_p9 = por %p675_p7, %p674_p3 }
  0x44   : > { %p677_p2 = pnand %p676_p9, %p670_p13 }
  0x46   : > { %680 = shalt.err (!%p677_p2)
}
  0x47   : > { %574 = dma.hbm_to_vmem [thread:$0]  (!%p888_p11), %s886_s9, 128, %s892_s28, %s176_s10  }
  0x48   : > { %p1012_p5 = scmp.ne.s32.totalorder %s1007_s23, 0 }
  0x49   : > { %s922_s25 = sand.u32 (!%p1012_p5), 1, %s743_s16   ;;  %p1013_p0 = scmp.ne.s32.totalorder (!%p1012_p5), %s1005_s21, 0 }
  0x4a   : > { %202 = sbr.rel (%p1012_p5) target bundleno = 660 (0x294), region = 36  ;;  %s475_s11 = sshll.u32 (!%p1012_p5), %s922_s25, 3 }
  0x4b   : > { %s205_s12 = scalar_lea.sflag (!%p1012_p5), [#allocation3], %s922_s25  ;;  %s928_s13 = scalar_lea.vmem (!%p1012_p5), [#allocation2], %s475_s11 }
  0x51   : > { %726 = dma.done.wait (%p1013_p0), %s205_s12, 128  }
  0x52   : > { %728 = vsyncadd (%p1013_p0), %s205_s12, 4294967168  ;;  %p1014_p11 = scmp.eq.s32.totalorder %s807_s19, 0 }
  0x54   : > { %730 = dma.done.wait (%p1014_p11), [#allocation6], 2048   ;;  %p1015_p1 = pmov %p1014_p11 }
  0x55   : > { %v757_v0 = vmov 0.0|0.0   ;;  %vm758_vm0 = vmmov 0   ;;  %v759_v1 = vmov 0.0   ;;  %v246_v2 = vld [vmem:[#allocation5] sm:$0xff]  ;;  %v247_v3 = vld [vmem:[#allocation5 + $0x8] sm:$0xff]  ;;  %v248_v4 = vld [vmem:[#allocation5 + $0x10] sm:$0xff]  ;;  %v263_v27 = vlaneseq }
  0x56   : > { %732 = vsyncadd (%p1015_p1), [#allocation6], 4294965248  ;;  %535 = vmatprep.subr.bf16.mxu0 %v757_v0  ;;  %532 = vmatprep.mubr.msk.f32.mxu0 %vm758_vm0, %v759_v1  ;;  %v536_v5 = vpack.c.bf16 %v247_v3, %v246_v2  ;;  %v249_v6 = vld [vmem:[#allocation5 + $0x18] sm:$0xff]  ;;  %v250_v8 = vld [vmem:[#allocation5 + $0x20] sm:$0xff]  ;;  %p241_p4 = scmp.lt.s32.totalorder %s807_s19, 1  ;;  %s480_s20 = sshll.u32 %s807_s19, 7 }
  0x57   : > { %v539_v7 = vpack.c.bf16 %v249_v6, %v248_v4  ;;  %v251_v9 = vld [vmem:[#allocation5 + $0x28] sm:$0xff]  ;;  %v252_v11 = vld [vmem:[#allocation5 + $0x30] sm:$0xff]  ;;  %v253_v12 = vld [vmem:[#allocation5 + $0x38] sm:$0xff]  ;;  %v264_v28 = vshrl.u32 %v263_v27, 7  ;;  %s240_s6 = scalar_lea.vmem [#allocation7], %s475_s11  ;;  %s953_s8 = scalar_lea.hbm %s1001_s4, %s480_s20 }
  0x58   : > { %537 = vmatpush3.bf16.msra.mxu0 %v536_v5  ;;  %v542_v10 = vpack.c.bf16 %v251_v9, %v250_v8  ;;  %v545_v13 = vpack.c.bf16 %v253_v12, %v252_v11  ;;  %v254_v14 = vld [vmem:[#allocation5 + $0x40] sm:$0xff]  ;;  %v255_v15 = vld [vmem:[#allocation5 + $0x48] sm:$0xff]  ;;  %v256_v17 = vld [vmem:[#allocation5 + $0x50] sm:$0xff]  ;;  %s242_s21 = scalar_select %p241_p4, %s807_s19, 1 }
  0x59   : > { %538 = vmatprep.subr.bf16.mxu0 %v757_v0  ;;  %v548_v16 = vpack.c.bf16 %v255_v15, %v254_v14  ;;  %v257_v18 = vld [vmem:[#allocation5 + $0x58] sm:$0xff]  ;;  %v258_v20 = vld [vmem:[#allocation5 + $0x60] sm:$0xff]  ;;  %v259_v21 = vld [vmem:[#allocation5 + $0x68] sm:$0xff]  ;;  %v265_v29 = vsub.s32 0, %v264_v28  ;;  %v353_v44 = vsub.s32 1, %v264_v28  ;;  %v358_v45 = vsub.s32 2, %v264_v28 }
  0x5a   : > { %v551_v19 = vpack.c.bf16 %v257_v18, %v256_v17  ;;  %v554_v22 = vpack.c.bf16 %v259_v21, %v258_v20  ;;  %v260_v23 = vld [vmem:[#allocation5 + $0x70] sm:$0xff]  ;;  %v261_v24 = vld [vmem:[#allocation5 + $0x78] sm:$0xff]  ;;  %v262_v30 = vld [vmem:[%s1000_s3] sm:$0x7]  ;;  %s478_s28 = sshll.u32 %s242_s21, 3  ;;  %s376_s5 = sshll.u32 %s240_s6, 4  ;;  %s955_s5 = int_to_ptr.vmem [resolvable:$true] %s376_s5 }
  0x5b   : > { %v557_v25 = vpack.c.bf16 %v261_v24, %v260_v23  ;;  %v245_v26 = vld [vmem:[%s928_s13] sm:$0xff]  ;;  %v266_v31 = vrot.slane %v262_v30, %v265_v29  ;;  %s244_s14 = scalar_lea.vmem %s998_s1, %s478_s28  ;;  %v354_v46 = vrot.slane %v262_v30, %v353_v44  ;;  %v359_v48 = vrot.slane %v262_v30, %v358_v45  ;;  %s363_s12 = scalar_lea.sflag [#allocation4], %s922_s25 }
  0x5c   : > { %540 = vmatpush3.bf16.msra.mxu0 %v539_v7  ;;  %v337_v33 = vld [vmem:[%s244_s14] sm:$0xff]  ;;  %s681_s13 = scalar_lea.vmem %s955_s5, 128  ;;  %s760_s19 = smov [#allocation7]  }
  0x5d   : > { %541 = vmatprep.subr.bf16.mxu0 %v757_v0  ;;  %p682_p6 = scmp.ne.s32.totalorder %s955_s5, %s681_s13  ;;  %s685_s11 = sshll.u32 %s760_s19, 4  ;;  %s686_s11 = int_to_ptr.vmem [resolvable:$false] %s685_s11 }
  0x5e   : > { %s687_s21 = scalar_lea.vmem %s686_s11, 256  ;;  %p688_p13 = scmp.lt.s32.totalorder %s955_s5, %s686_s11 }
  0x5f   : > { %p683_p8 = pnand %p682_p6, %p877_p12  ;;  %p689_p3 = scmp.lt.s32.totalorder %s687_s21, %s681_s13 }
  0x60   : > { %543 = vmatpush3.bf16.msra.mxu0 %v542_v10 }
  0x61   : > { %544 = vmatprep.subr.bf16.mxu0 %v757_v0  ;;  %p684_p10 = pneg %p683_p8  ;;  %p690_p7 = por %p689_p3, %p688_p13 }
  0x63   : > { %p691_p9 = pnand %p690_p7, %p684_p10 }
  0x64   : > { %546 = vmatpush3.bf16.msra.mxu0 %v545_v13 }
  0x65   : > { %547 = vmatprep.subr.bf16.mxu0 %v757_v0 }
  0x68   : > { %549 = vmatpush3.bf16.msra.mxu0 %v548_v16 }
  0x69   : > { %550 = vmatprep.subr.bf16.mxu0 %v757_v0 }
  0x6c   : > { %552 = vmatpush3.bf16.msra.mxu0 %v551_v19 }
  0x6d   : > { %553 = vmatprep.subr.bf16.mxu0 %v757_v0 }
  0x70   : > { %555 = vmatpush3.bf16.msra.mxu0 %v554_v22 }
  0x71   : > { %556 = vmatprep.subr.bf16.mxu0 %v757_v0 }
  0x74   : > { %558 = vmatpush3.bf16.msra.mxu0 %v557_v25 }
  0x77   : > { %533 = vmatmul.mubr.f32.vlgmr.msra.gmra.mrb[0].mxu0 %v245_v26 }
 0x14a   : > { %v333_v32 = vpop.f32.mrb[0].mxu0 }
 0x14b   : > { %v334_v34 = vadd.f32 %v333_v32, %v266_v31  ;;  %v534_v35 = vpop.f32.mrb[1].mxu0 }
 0x14d   : > { %v338_v36 = vadd.f32 %v337_v33, %v334_v34 }
 0x14f   : > { %339 = vadd.xlane.f32.xlu0 %v338_v36 }
 0x1dc   : > { %v340_v37 = vpop.xlane.xlu0 %339 }
 0x1dd   : > { %v342_v38 = vmul.f32 0.0078125, %v340_v37 }
 0x1df   : > { %v343_v39 = vsub.f32 %v338_v36, %v342_v38 }
 0x1e1   : > { %v344_v40 = vmul.f32 %v343_v39, %v343_v39 }
 0x1e3   : > { %345 = vadd.xlane.f32.xlu0 %v344_v40 }
 0x270   : > { %v346_v41 = vpop.xlane.xlu0 %345 }
 0x271   : > { %v347_v42 = vmul.f32 0.0078125, %v346_v41 }
 0x273   : > { %v348_v43 = vadd.f32 1e-12, %v347_v42 }
 0x275   : > { %621 = vrsqrt.f32 %v348_v43 }
 0x27f   : > { %v622_v47 = vpop.eup %621 }
 0x280   : > { %v350_v49 = vmul.f32 %v622_v47, %v343_v39 }
 0x282   : > { %v355_v50 = vmul.f32 %v354_v46, %v350_v49 }
 0x284   : > { %v360_v51 = vadd.f32 %v359_v48, %v355_v50 }
 0x286   : > { %361 = vst [vmem:[%s240_s6] sm:$0xff] %v360_v51 }
 0x287   : > { %694 = shalt.err (!%p691_p9)
}
 0x288   : > { %s695_s25 = scalar_lea.hbm %s953_s8, 128  ;;  %s699_s28 = scalar_lea.hbm %s1001_s4, 256 }
 0x289   : > { %p696_p2 = scmp.ne.s32.totalorder %s953_s8, %s695_s25  ;;  %p700_p11 = scmp.lt.u32.totalorder %s953_s8, %s1001_s4 }
 0x28a   : > { %p701_p1 = scmp.lt.u32.totalorder %s699_s28, %s695_s25  ;;  %p703_p6 = scmp.lt.u32.totalorder %s695_s25, %s953_s8 }
 0x28b   : > { %p697_p5 = pnand %p696_p2, %p877_p12 }
 0x28c   : > { %p702_p4 = por %p701_p1, %p700_p11 }
 0x28d   : > { %p698_p0 = pneg %p697_p5 }
 0x28e   : > { %p704_p8 = por %p703_p6, %p702_p4 }
 0x290   : > { %p705_p10 = pnand %p704_p8, %p698_p0 }
 0x292   : > { %708 = shalt.err (!%p705_p10)
}
 0x293   : > { %565 = dma.vmem_to_hbm [thread:$0]  (%p877_p12), %s955_s5, 128, %s953_s8, %s363_s12  }
 0x294 PF: > { %s388_s14 = sand.u32 1, %s739_s15   ;;  %p1016_p13 = scmp.ne.s32.totalorder %s1006_s22, 0 }
 0x295   : > { %p1017_p3 = scmp.ge.s32.totalorder %s751_s18, 2  ;;  %s389_s20 = scalar_lea.sflag [#allocation4], %s388_s14 }
 0x297   : > { %p576_p7 = pnand %p1017_p3, %p1016_p13 }
 0x299   : > { %734 = dma.done.wait (!%p576_p7), %s389_s20, 128  }
 0x29a   : > { %736 = vsyncadd (!%p576_p7), %s389_s20, 4294967168  ;;  %p18_p9 = scmp.ge.s32.totalorder %s842_s27, 4   ;;  %s1018_s15 = smov %s743_s16 }
 0x29b   : > { %s1019_s16 = smov %s747_s17  ;;  %s1020_s17 = smov %s873_s24 }
 0x29c   : > { %s1021_s18 = smov %s842_s27  ;;  %20 = sbr.rel (!%p18_p9) target bundleno = 6 (0x6), region = 88 }
 0x2a3   :  { %394 = vsyncpa [#allocation3], 1 }
 0x2a4   :  { %396 = vsyncpa [#allocation3 + $0x1], 1 }
 0x2a5   :  { %397 = vsyncpa [#allocation6], 1 }
 0x2a6   :  { %398 = vsyncpa [#allocation4], 1 }
 0x2a7   :  { %400 = vsyncpa [#allocation4 + $0x1], 1 }

</bundles_post_ra>
